<compile_context>
chip_gen: v6e
topology: v6e:2x2x1
jax: 0.10.0
libtpu: 0.0.40
codegen_flags: <defaults>
</compile_context>

<pallas_src>
import functools

import jax
import jax.numpy as jnp
from jax import lax
from jax.experimental import pallas as pl
from jax.experimental.pallas import tpu as pltpu


def _round_up(a, b):
    return ((a + b - 1) // b) * b


def _vmem_limit_bytes():
    """Per-chip VMEM limit: ~48 MiB on v7x (64 MiB physical), ~100 MiB on v5e/v6e."""
    cap = 64 << 20
    try:
        info = pltpu.get_tpu_info()
        cap = int(getattr(info, "vmem_capacity_bytes", cap)) or cap
    except Exception:
        pass
    return min(max(cap - (16 << 20), 32 << 20), 100 << 20)


def _pick_row_tile(nc):
    """Rows (= (n,c) pairs) per block: multiple of 8; >=2 tiles when nc >= 16
    so the row axis can shard across v7x's two TensorCores."""
    if nc <= 16:
        return _round_up(nc, 8)
    return min(_round_up(pl.cdiv(nc, 2), 8), 1024)


def _pick_lane_tile(hw, rows, bytes_per_lane_col, budget):
    """Largest lane-dense (multiple-of-128) spatial tile that fits the budget."""
    t = budget // (rows * bytes_per_lane_col)
    t = max(128, (t // 128) * 128)
    return min(t, _round_up(hw, 128))


# ---------------------------------------------------------------------------
# Pass 1: streaming per-row sum over the flattened spatial axis.
#   x_ref: (R, T) native dtype;  o_ref: (R, 1) f32, resident over the t axis.
# ---------------------------------------------------------------------------
def _sum_kernel(x_ref, o_ref, *, hw, block_t, ragged):
    t = pl.program_id(1)

    @pl.when(t == 0)
    def _():
        o_ref[...] = jnp.zeros_like(o_ref)

    x = x_ref[...].astype(jnp.float32)
    if ragged:
        # Mask lanes beyond the true spatial extent (boundary-tile garbage).
        lane = lax.broadcasted_iota(jnp.int32, (1, x.shape[1]), 1) + t * block_t
        x = jnp.where(lane < hw, x, 0.0)
    o_ref[...] += jnp.sum(x, axis=-1, keepdims=True)


# ---------------------------------------------------------------------------
# Pass 2: streaming gated multiply  out = x * gate  (gate broadcast over HW).
#   x_ref: (R, T);  g_ref: (R, 1) in x's dtype;  o_ref: (R, T).
#   Boundary blocks (rows > NC, lanes > HW) are write-masked by Pallas.
# ---------------------------------------------------------------------------
def _scale_kernel(x_ref, g_ref, o_ref):
    o_ref[...] = x_ref[...] * g_ref[...]


@jax.jit
def cse_forward(x_nchw, w_squeeze, w_excite):
    """x_nchw: (N, C, H, W); w_squeeze: (C//2, C); w_excite: (C, C//2)."""
    N, C, H, W = x_nchw.shape
    NC, HW = N * C, H * W
    in_bytes = jnp.dtype(x_nchw.dtype).itemsize

    x2 = x_nchw.reshape(NC, HW)           # free, contiguous collapse

    vmem_limit = _vmem_limit_bytes()
    budget = vmem_limit - (4 << 20)       # headroom for compiler scratch/sems

    R = _pick_row_tile(NC)
    n_rows = pl.cdiv(NC, R)

    # --- Pass 1: per-(n, c) spatial sums ------------------------------------
    # Per lane-column bytes: 2x double-buffered input + f32 cast/mask temps.
    T1 = _pick_lane_tile(HW, R, 2 * in_bytes + 12, budget)
    n_hw1 = pl.cdiv(HW, T1)
    ragged = (n_hw1 * T1 != HW)

    sums = pl.pallas_call(
        functools.partial(_sum_kernel, hw=HW, block_t=T1, ragged=ragged),
        out_shape=jax.ShapeDtypeStruct((NC, 1), jnp.float32),
        grid_spec=pltpu.PrefetchScalarGridSpec(
            num_scalar_prefetch=0,
            grid=(n_rows, n_hw1),
            in_specs=[pl.BlockSpec((R, T1), lambda r, t: (r, t))],
            out_specs=pl.BlockSpec((R, 1), lambda r, t: (r, 0)),
        ),
        compiler_params=pltpu.CompilerParams(
            dimension_semantics=("parallel", "arbitrary"),
            vmem_limit_bytes=vmem_limit,
        ),
    )(x2)

    # --- tiny squeeze / excite 1x1 convs + sigmoid (plain XLA, fused) -------
    m = sums.reshape(N, C)                                      # row sums
    w1 = w_squeeze.astype(jnp.float32) * (1.0 / HW)             # fold mean divisor
    y1 = jnp.dot(m, w1.T, preferred_element_type=jnp.float32)   # (N, C//2)
    y2 = jnp.dot(y1, w_excite.astype(jnp.float32).T,
                 preferred_element_type=jnp.float32)            # (N, C)
    gate = jax.nn.sigmoid(y2).astype(x_nchw.dtype).reshape(NC, 1)

    # --- Pass 2: streaming gated multiply -----------------------------------
    # Per lane-column bytes: 2x double-buffered input + 2x double-buffered out.
    T2 = _pick_lane_tile(HW, R, 4 * in_bytes, budget)
    n_hw2 = pl.cdiv(HW, T2)

    out2 = pl.pallas_call(
        _scale_kernel,
        out_shape=jax.ShapeDtypeStruct((NC, HW), x_nchw.dtype),
        grid_spec=pltpu.PrefetchScalarGridSpec(
            num_scalar_prefetch=0,
            grid=(n_rows, n_hw2),
            in_specs=[
                pl.BlockSpec((R, T2), lambda r, t: (r, t)),
                pl.BlockSpec((R, 1), lambda r, t: (r, 0)),
            ],
            out_specs=pl.BlockSpec((R, T2), lambda r, t: (r, t)),
        ),
        compiler_params=pltpu.CompilerParams(
            dimension_semantics=("parallel", "parallel"),
            vmem_limit_bytes=vmem_limit,
        ),
    )(x2, gate)

    return out2.reshape(N, C, H, W)


def cse_reference(x_nchw, w_squeeze, w_excite):
    """Pure-JAX reference matching the PyTorch forward."""
    mean = jnp.mean(x_nchw.astype(jnp.float32), axis=(2, 3))  # (N, C)
    y1 = mean @ w_squeeze.astype(jnp.float32).T               # (N, C//2)
    y2 = y1 @ w_excite.astype(jnp.float32).T                  # (N, C)
    gate = jax.nn.sigmoid(y2)[:, :, None, None]               # (N, C, 1, 1)
    return (x_nchw * gate.astype(x_nchw.dtype)).astype(x_nchw.dtype)


if __name__ == "__main__":
    key = jax.random.PRNGKey(0)

    # Primary case (aligned spatial size).
    k_x, k_w1, k_w2, key = jax.random.split(key, 4)
    N, C, H, W = 2, 4, 16, 16
    x = jax.random.normal(k_x, (N, C, H, W), dtype=jnp.float32)
    # Conv_Squeeze:    Conv2d(C, C//2, 1, bias=False) -> weight (C//2, C, 1, 1)
    # Conv_Excitation: Conv2d(C//2, C, 1, bias=False) -> weight (C, C//2, 1, 1)
    w_squeeze = 0.25 * jax.random.normal(k_w1, (C // 2, C), dtype=jnp.float32)
    w_excite = 0.25 * jax.random.normal(k_w2, (C, C // 2), dtype=jnp.float32)

    out = jax.block_until_ready(cse_forward(x, w_squeeze, w_excite))
    ref = cse_reference(x, w_squeeze, w_excite)
    assert out.shape == x.shape and out.dtype == x.dtype
    assert jnp.allclose(out, ref, atol=1e-5, rtol=1e-5), "mismatch vs reference"

    # Second case: ragged spatial size (HW % 128 != 0) and NC not a multiple
    # of 8 -> exercises the in-kernel lane masking and boundary-row handling.
    k_x, k_w1, k_w2, key = jax.random.split(key, 4)
    N2, C2, H2, W2 = 2, 6, 10, 10
    x_r = jax.random.normal(k_x, (N2, C2, H2, W2), dtype=jnp.float32)
    w_sq_r = 0.25 * jax.random.normal(k_w1, (C2 // 2, C2), dtype=jnp.float32)
    w_ex_r = 0.25 * jax.random.normal(k_w2, (C2, C2 // 2), dtype=jnp.float32)

    out_r = jax.block_until_ready(cse_forward(x_r, w_sq_r, w_ex_r))
    ref_r = cse_reference(x_r, w_sq_r, w_ex_r)
    assert out_r.shape == x_r.shape and out_r.dtype == x_r.dtype
    assert jnp.allclose(out_r, ref_r, atol=1e-5, rtol=1e-5), "ragged mismatch"

    print("KERNEL_OK")
</pallas_src>

<mosaic_0001>
module attributes {stable_mosaic.version = 11 : i64} {
  func.func @_sum_kernel(%arg0: i32, %arg1: i32, %arg2: memref<8x256xf32, #tpu.memory_space<vmem>>, %arg3: memref<8x1xf32, #tpu.memory_space<vmem>>) attributes {dimension_semantics = [#tpu.dimension_semantics<parallel>, #tpu.dimension_semantics<arbitrary>], iteration_bounds = array<i64: 1, 1>, scalar_prefetch = 0 : i64, scratch_operands = 0 : i64, tpu.core_type = #tpu.core_type<tc>, window_params = [{transform_indices = @transform_0, window_bounds = array<i64: 8, 256>}, {transform_indices = @transform_1, window_bounds = array<i64: 8, 1>}]} {
    %c0_i32 = arith.constant 0 : i32
    %0 = arith.cmpi eq, %arg1, %c0_i32 : i32
    %1 = arith.extui %0 : i1 to i32
    %c0_i32_0 = arith.constant 0 : i32
    %2 = arith.cmpi ne, %1, %c0_i32_0 : i32
    scf.if %2 {
      %cst_6 = arith.constant 0.000000e+00 : f32
      %9 = vector.broadcast %cst_6 : f32 to vector<8x1xf32>
      %c0_7 = arith.constant 0 : index
      %c0_8 = arith.constant 0 : index
      %10 = vector.load %arg3[%c0_7, %c0_8] : memref<8x1xf32, #tpu.memory_space<vmem>>, vector<8x1xf32>
      tpu.vector_store %arg3[%c0_7, %c0_8], %9 {strides = array<i32>} : memref<8x1xf32, #tpu.memory_space<vmem>>, vector<8x1xf32>,
    } else {
    }
    %c0 = arith.constant 0 : index
    %c0_1 = arith.constant 0 : index
    %3 = vector.load %arg2[%c0, %c0_1] : memref<8x256xf32, #tpu.memory_space<vmem>>, vector<8x256xf32>
    %c0_2 = arith.constant 0 : index
    %c0_3 = arith.constant 0 : index
    %4 = vector.load %arg3[%c0_2, %c0_3] : memref<8x1xf32, #tpu.memory_space<vmem>>, vector<8x1xf32>
    %cst = arith.constant dense<0.000000e+00> : vector<8xf32>
    %5 = vector.multi_reduction <add>, %3, %cst [1] : vector<8x256xf32> to vector<8xf32>
    %6 = vector.shape_cast %5 : vector<8xf32> to vector<8x1xf32>
    %7 = arith.addf %4, %6 : vector<8x1xf32>
    %c0_4 = arith.constant 0 : index
    %c0_5 = arith.constant 0 : index
    %8 = vector.load %arg3[%c0_4, %c0_5] : memref<8x1xf32, #tpu.memory_space<vmem>>, vector<8x1xf32>
    tpu.vector_store %arg3[%c0_4, %c0_5], %7 {strides = array<i32>} : memref<8x1xf32, #tpu.memory_space<vmem>>, vector<8x1xf32>,
    return
  }
  func.func @transform_0(%arg0: i32, %arg1: i32) -> (i32, i32) {
    %c0_i32 = arith.constant 0 : i32
    return %arg0, %arg1 : i32, i32
  }
  func.func @transform_1(%arg0: i32, %arg1: i32) -> (i32, i32) {
    %c0_i32 = arith.constant 0 : i32
    %c0_i32_0 = arith.constant 0 : i32
    return %arg0, %c0_i32 : i32, i32
  }
}

module attributes {stable_mosaic.version = 11 : i64} {
  func.func @_scale_kernel(%arg0: i32, %arg1: i32, %arg2: memref<8x256xf32, #tpu.memory_space<vmem>>, %arg3: memref<8x1xf32, #tpu.memory_space<vmem>>, %arg4: memref<8x256xf32, #tpu.memory_space<vmem>>) attributes {dimension_semantics = [#tpu.dimension_semantics<parallel>, #tpu.dimension_semantics<parallel>], iteration_bounds = array<i64: 1, 1>, scalar_prefetch = 0 : i64, scratch_operands = 0 : i64, tpu.core_type = #tpu.core_type<tc>, window_params = [{transform_indices = @transform_0, window_bounds = array<i64: 8, 256>}, {transform_indices = @transform_1, window_bounds = array<i64: 8, 1>}, {transform_indices = @transform_2, window_bounds = array<i64: 8, 256>}]} {
    %c0 = arith.constant 0 : index
    %c0_0 = arith.constant 0 : index
    %0 = vector.load %arg2[%c0, %c0_0] : memref<8x256xf32, #tpu.memory_space<vmem>>, vector<8x256xf32>
    %c0_1 = arith.constant 0 : index
    %c0_2 = arith.constant 0 : index
    %1 = vector.load %arg3[%c0_1, %c0_2] : memref<8x1xf32, #tpu.memory_space<vmem>>, vector<8x1xf32>
    %2 = vector.broadcast %1 : vector<8x1xf32> to vector<8x256xf32>
    %3 = arith.mulf %0, %2 : vector<8x256xf32>
    %c0_3 = arith.constant 0 : index
    %c0_4 = arith.constant 0 : index
    %4 = vector.load %arg4[%c0_3, %c0_4] : memref<8x256xf32, #tpu.memory_space<vmem>>, vector<8x256xf32>
    tpu.vector_store %arg4[%c0_3, %c0_4], %3 {strides = array<i32>} : memref<8x256xf32, #tpu.memory_space<vmem>>, vector<8x256xf32>,
    return
  }
  func.func @transform_0(%arg0: i32, %arg1: i32) -> (i32, i32) {
    %c0_i32 = arith.constant 0 : i32
    return %arg0, %arg1 : i32, i32
  }
  func.func @transform_1(%arg0: i32, %arg1: i32) -> (i32, i32) {
    %c0_i32 = arith.constant 0 : i32
    %c0_i32_0 = arith.constant 0 : i32
    return %arg0, %c0_i32 : i32, i32
  }
  func.func @transform_2(%arg0: i32, %arg1: i32) -> (i32, i32) {
    %c0_i32 = arith.constant 0 : i32
    return %arg0, %arg1 : i32, i32
  }
}

</mosaic_0001>

<bundles_post_ra>
// kernel: cse_forward.2
= control target key start
LH: loop header
LB: loop body
LE: loop exit
PB: predicated region body
PF: predicated region fallthrough
CT: control target
= control target key end

     0   :  { %vm12_vm0 = vcmask 7168   ;;  %v28_v2 = vmov 0.0   ;;  %s54_s0 = inlined_call_operand.vmem [shape: f32[8,256], index: 0, kind: input, shape index: {}]   ;;  %s55_s1 = inlined_call_operand.vmem [shape: f32[8,1], index: 1, kind: output, shape index: {}]  }
   0x1   :  { %v14_v0 = vld [vmem:[%s54_s0] sm:$0xff]  ;;  %v15_v1 = vld [vmem:[%s54_s0 + $0x8] sm:$0xff]  ;;  %13 = vst.msk [vmem:[%s55_s1] sm:$0xff] %vm12_vm0, %v28_v2 }
   0x2   :  { %v17_v3 = vadd.f32 %v15_v1, %v14_v0 }
   0x4   :  { %18 = vadd.xlane.f32.xlu0 %v17_v3 }
   0x8   :  { %v16_v4 = vld [vmem:[%s55_s1] sm:$0xff] }
  0x8d   :  { %v19_v5 = vpop.xlane.xlu0 %18 }
  0x8e   :  { %v20_v6 = vadd.f32 %v19_v5, %v16_v4 }
  0x90   :  { %22 = vst.msk [vmem:[%s55_s1] sm:$0xff] %vm12_vm0, %v20_v6 }

// kernel: cse_forward.3
= control target key start
LH: loop header
LB: loop body
LE: loop exit
PB: predicated region body
PF: predicated region fallthrough
CT: control target
= control target key end

     0   :  { %v29_v0 = vmov 0   ;;  %s60_s1 = inlined_call_operand.vmem [shape: f32[8,1], index: 1, kind: input, shape index: {}]   ;;  %s61_s0 = inlined_call_operand.vmem [shape: f32[8,256], index: 0, kind: input, shape index: {}]   ;;  %s62_s2 = inlined_call_operand.vmem [shape: f32[8,256], index: 2, kind: output, shape index: {}]  }
   0x1   :  { %28 = vset.pattern.permute.xlu0 %v29_v0  ;;  %v13_v1 = vld [vmem:[%s60_s1] sm:$0xff]  ;;  %v12_v3 = vld [vmem:[%s61_s0 + $0x8] sm:$0xff] }
   0x2   :  { %16 = vperm.xlu0 %28, %v13_v1   ;;  %v11_v2 = vld [vmem:[%s61_s0] sm:$0xff] }
  0x7d   :  { %v17_v4 = vpop.permute.xlu0 %16 }
  0x7e   :  { %v19_v5 = vmul.f32 %v17_v4, %v11_v2  ;;  %v20_v6 = vmul.f32 %v17_v4, %v12_v3 }
  0x80   :  { %21 = vst [vmem:[%s62_s2] sm:$0xff] %v19_v5  ;;  %22 = vst [vmem:[%s62_s2 + $0x8] sm:$0xff] %v20_v6 }

</bundles_post_ra>
